<compile_context>
chip_gen: v5e
topology: v5e:2x2
jax: 0.10.0
libtpu: 0.0.40
codegen_flags: <defaults>
</compile_context>

<pallas_src>
import functools
import math

import jax
import jax.numpy as jnp
from jax.experimental import pallas as pl
from jax.experimental.pallas import tpu as pltpu

_VMEM = pl.BlockSpec(memory_space=pltpu.MemorySpace.VMEM)  # whole-array-in-VMEM spec

# M-stripe target.  With resident weights the per-step VMEM footprint at real
# DistilBERT shapes (K,N <= 3072) is roughly:
#   x (tm x K bf16) x2 + w (K x N bf16) x2 + out (tm x N bf16) x2  ~= 17 MiB at tm=512
# which fits the default 32 MiB scoped VMEM on all of v5e / v6e / v7x.
_TM = 512


def _tile(dim, target, align):
    """Largest multiple of `align` that divides `dim` and is <= target."""
    if dim <= target:
        return dim
    best = None
    t = align
    while t <= target:
        if dim % t == 0:
            best = t
        t += align
    return best if best is not None else dim  # fallback: whole dim stays in VMEM


# ------------------------------------------------------------------ kernels --
def _linear_kernel(x_ref, wt_ref, b_ref, o_ref, *, act):
    # One (tm, N) output stripe; the whole (K, N) weight is VMEM-resident and
    # the full K contraction happens in a single MXU dot (f32 accumulation).
    y = jnp.dot(x_ref[...], wt_ref[...],
                preferred_element_type=jnp.float32) + b_ref[...]
    if act == "gelu":
        # TODO(synk): HF DistilBERT uses exact erf-GELU; tanh approximation here
        # (jnp.tanh rides the EUP slot, so the epilogue stays cheap).
        y = 0.5 * y * (1.0 + jnp.tanh(
            0.7978845608028654 * (y + 0.044715 * (y * y * y))))
    elif act == "silu":
        y = y * (1.0 / (1.0 + jnp.exp(-y)))
    o_ref[...] = y.astype(o_ref.dtype)


def _linear_add_ln_kernel(x_ref, wt_ref, b_ref, r_ref, g_ref, lb_ref,
                          o_ref, *, eps):
    # y = LayerNorm((x @ Wt + b) + residual), LN statistics in f32.
    y = jnp.dot(x_ref[...], wt_ref[...], preferred_element_type=jnp.float32)
    y = y + b_ref[...] + r_ref[...].astype(jnp.float32)
    mu = jnp.mean(y, axis=-1, keepdims=True)
    yc = y - mu
    var = jnp.mean(yc * yc, axis=-1, keepdims=True)
    o_ref[...] = (yc * jax.lax.rsqrt(var + eps) * g_ref[...]
                  + lb_ref[...]).astype(o_ref.dtype)


def _emb_ln_kernel(we_ref, pe_ref, g_ref, b_ref, o_ref, *, eps):
    # LayerNorm(word_emb + pos_emb); pos_emb is a resident (S, D) block, so
    # the broadcast over batch never touches HBM.
    x = we_ref[0].astype(jnp.float32) + pe_ref[...].astype(jnp.float32)
    mu = jnp.mean(x, axis=-1, keepdims=True)
    xc = x - mu
    var = jnp.mean(xc * xc, axis=-1, keepdims=True)
    o_ref[0] = (xc * jax.lax.rsqrt(var + eps) * g_ref[...]
                + b_ref[...]).astype(o_ref.dtype)


def _attention_kernel(q_ref, k_ref, v_ref, m_ref, o_ref,
                      *, num_heads, head_dim, scale):
    # One batch element per grid step.  Q/K/V are lane-dense (S, D) slabs
    # sliced from the packed (B, S, 3D) activation by the BlockSpec index_maps;
    # the static head loop keeps every load/store lane-dense (last dim D).
    q = q_ref[0]                           # (S, D) bf16
    k = k_ref[0]                           # (S, D) bf16
    v = v_ref[0]                           # (S, D) bf16
    mask = m_ref[0]                        # (1, S) f32: 1 = keep, 0 = masked key
    chunks = []
    for h in range(num_heads):
        lo = h * head_dim
        qh = q[:, lo:lo + head_dim]
        kh = k[:, lo:lo + head_dim]
        vh = v[:, lo:lo + head_dim]
        s = jax.lax.dot_general(qh, kh, (((1,), (1,)), ((), ())),
                                preferred_element_type=jnp.float32) * scale
        s = jnp.where(mask < 0.5, -1e9, s)           # bf16-safe large negative fill
        s = s - jnp.max(s, axis=-1, keepdims=True)
        p = jnp.exp(s)
        p = p / jnp.sum(p, axis=-1, keepdims=True)   # exact; softmax is not the bottleneck
        chunks.append(jnp.dot(p.astype(vh.dtype), vh,
                              preferred_element_type=jnp.float32))
    o_ref[0] = jnp.concatenate(chunks, axis=-1).astype(o_ref.dtype)


def _head_kernel(x_ref, wpt_ref, bp_ref, wct_ref, bc_ref, o_ref):
    # pre_classifier -> SiLU -> dropout(eval: identity) -> classifier.
    # Classifier output is padded to 128 lanes (lane-dense store); the wrapper
    # slices the 77 real classes back out.
    h = jnp.dot(x_ref[...], wpt_ref[...],
                preferred_element_type=jnp.float32) + bp_ref[...]
    h = h * (1.0 / (1.0 + jnp.exp(-h)))              # SiLU in f32
    o_ref[...] = (jnp.dot(h.astype(jnp.bfloat16), wct_ref[...],
                          preferred_element_type=jnp.float32) + bc_ref[...])


# ----------------------------------------------------------------- wrappers --
def linear(x, wt, b, act=None):
    m, k = x.shape
    n = wt.shape[1]
    tm = _tile(m, _TM, 16)                           # 16-row align: bf16 sublane packing
    return pl.pallas_call(
        functools.partial(_linear_kernel, act=act),
        out_shape=jax.ShapeDtypeStruct((m, n), jnp.bfloat16),
        grid=(m // tm,),
        in_specs=[pl.BlockSpec((tm, k), lambda i: (i, 0)),
                  pl.BlockSpec((k, n), lambda i: (0, 0)),   # resident weight
                  pl.BlockSpec((1, n), lambda i: (0, 0))],
        out_specs=pl.BlockSpec((tm, n), lambda i: (i, 0)),
        compiler_params=pltpu.CompilerParams(dimension_semantics=("parallel",)),
    )(x, wt, b.reshape(1, n))


def linear_add_layernorm(x, wt, b, residual, gamma, beta, eps=1e-12):
    m, k = x.shape
    n = wt.shape[1]
    tm = _tile(m, _TM, 16)
    return pl.pallas_call(
        functools.partial(_linear_add_ln_kernel, eps=eps),
        out_shape=jax.ShapeDtypeStruct((m, n), jnp.bfloat16),
        grid=(m // tm,),
        in_specs=[pl.BlockSpec((tm, k), lambda i: (i, 0)),
                  pl.BlockSpec((k, n), lambda i: (0, 0)),   # resident weight
                  pl.BlockSpec((1, n), lambda i: (0, 0)),
                  pl.BlockSpec((tm, n), lambda i: (i, 0)),  # residual stream
                  pl.BlockSpec((1, n), lambda i: (0, 0)),
                  pl.BlockSpec((1, n), lambda i: (0, 0))],
        out_specs=pl.BlockSpec((tm, n), lambda i: (i, 0)),
        compiler_params=pltpu.CompilerParams(dimension_semantics=("parallel",)),
    )(x, wt, b.reshape(1, n), residual, gamma.reshape(1, n), beta.reshape(1, n))


def embed_layernorm(we, pe, gamma, beta, eps=1e-12):
    b, s, d = we.shape
    return pl.pallas_call(
        functools.partial(_emb_ln_kernel, eps=eps),
        out_shape=jax.ShapeDtypeStruct((b, s, d), jnp.bfloat16),
        grid=(b,),
        in_specs=[pl.BlockSpec((1, s, d), lambda i: (i, 0, 0)),
                  pl.BlockSpec((s, d), lambda i: (0, 0)),    # resident pos_emb
                  pl.BlockSpec((1, d), lambda i: (0, 0)),
                  pl.BlockSpec((1, d), lambda i: (0, 0))],
        out_specs=pl.BlockSpec((1, s, d), lambda i: (i, 0, 0)),
        compiler_params=pltpu.CompilerParams(dimension_semantics=("parallel",)),
    )(we, pe, gamma.reshape(1, d), beta.reshape(1, d))


def attention(qkv, key_mask, num_heads, head_dim, scale):
    # qkv: (B, S, 3D) packed [Q | K | V].  key_mask: (B, 1, S) f32.
    b, s, three_d = qkv.shape
    d = three_d // 3
    blk = (1, s, d)
    return pl.pallas_call(
        functools.partial(_attention_kernel, num_heads=num_heads,
                          head_dim=head_dim, scale=scale),
        out_shape=jax.ShapeDtypeStruct((b, s, d), jnp.bfloat16),
        grid=(b,),
        in_specs=[pl.BlockSpec(blk, lambda i: (i, 0, 0)),   # Q slab
                  pl.BlockSpec(blk, lambda i: (i, 0, 1)),   # K slab
                  pl.BlockSpec(blk, lambda i: (i, 0, 2)),   # V slab
                  pl.BlockSpec((1, 1, s), lambda i: (i, 0, 0))],
        out_specs=pl.BlockSpec(blk, lambda i: (i, 0, 0)),
        compiler_params=pltpu.CompilerParams(dimension_semantics=("parallel",)),
    )(qkv, qkv, qkv, key_mask)


def classifier_head(pooled, wpt, bp, wct_pad, bc_pad):
    b = pooled.shape[0]
    n_pad = wct_pad.shape[1]
    return pl.pallas_call(
        _head_kernel,
        out_shape=jax.ShapeDtypeStruct((b, n_pad), jnp.float32),
        in_specs=[_VMEM] * 5,
        out_specs=_VMEM,
    )(pooled, wpt, bp.reshape(1, -1), wct_pad, bc_pad.reshape(1, -1))


# ------------------------------------------------------------------ forward --
def dbert_classifier_forward(params, input_ids, attention_mask, cfg):
    B, S = input_ids.shape
    D, H = cfg["d"], cfg["heads"]
    hd = D // H
    T = B * S

    # Embedding lookup is glue (data-dependent gather, bf16 table); the
    # pos-emb add + LayerNorm runs in a kernel without materializing the
    # positional broadcast in HBM.
    we = jnp.take(params["word_emb"], input_ids, axis=0)              # (B, S, D) bf16
    x = embed_layernorm(we, params["pos_emb"][:S],
                        params["emb_ln_g"], params["emb_ln_b"])       # (B, S, D) bf16
    x = x.reshape(T, D)

    key_mask = attention_mask.astype(jnp.float32).reshape(B, 1, S)    # (B, 1, S)
    scale = 1.0 / math.sqrt(hd)

    for l in params["layers"]:
        # --- multi-head self attention ---
        qkv = linear(x, l["w_qkv_t"], l["b_qkv"])                     # (T, 3D) bf16
        ctx = attention(qkv.reshape(B, S, 3 * D), key_mask, H, hd, scale)
        ctx = ctx.reshape(T, D)
        # Output projection fused with residual add + LayerNorm.
        x = linear_add_layernorm(ctx, l["wo_t"], l["bo"], x, l["ln1_g"], l["ln1_b"])
        # --- feed forward: GELU fused into w1, residual+LN fused into w2 ---
        ff = linear(x, l["w1_t"], l["b1"], act="gelu")                # (T, F) bf16
        x = linear_add_layernorm(ff, l["w2_t"], l["b2"], x, l["ln2_g"], l["ln2_b"])

    pooled = x.reshape(B, S, D)[:, 0, :]                              # CLS, (B, D) bf16
    logits = classifier_head(pooled, params["wp_t"], params["bp"],
                             params["wc_t"], params["bc"])            # (B, 128) f32
    return logits[:, : cfg["n_classes"]]                              # (B, 77)


# --------------------------------------------------------------------- init --
def init_params(key, cfg):
    keys = iter(jax.random.split(key, 128))

    def dense_pt(nin, nout):   # PyTorch Linear layout: weight (out, in), bias (out,)
        w = 0.02 * jax.random.normal(next(keys), (nout, nin), jnp.float32)
        return w, jnp.zeros((nout,), jnp.float32)

    def prep(w):
        # One-time load conversion: (out, in) f32 -> (in, out) bf16.
        return jnp.asarray(w.T, dtype=jnp.bfloat16)

    D, F = cfg["d"], cfg["ffn"]
    p = {
        # Embedding tables stored in bf16 (halves gather + add_ln traffic);
        # LayerNorm statistics stay in f32 inside the kernel.
        "word_emb": (0.02 * jax.random.normal(next(keys), (cfg["vocab"], D),
                                              jnp.float32)).astype(jnp.bfloat16),
        "pos_emb": (0.02 * jax.random.normal(next(keys), (cfg["max_pos"], D),
                                             jnp.float32)).astype(jnp.bfloat16),
        "emb_ln_g": jnp.ones((D,), jnp.float32),
        "emb_ln_b": jnp.zeros((D,), jnp.float32),
        "layers": [],
    }
    for _ in range(cfg["n_layers"]):
        wq, bq = dense_pt(D, D)
        wk, bk = dense_pt(D, D)
        wv, bv = dense_pt(D, D)
        wo, bo = dense_pt(D, D)
        w1, b1 = dense_pt(D, F)
        w2, b2 = dense_pt(F, D)
        l = {
            # Fused QKV: concat along the out axis -> (3D, D), then (D, 3D) bf16.
            "w_qkv_t": prep(jnp.concatenate([wq, wk, wv], axis=0)),
            "b_qkv": jnp.concatenate([bq, bk, bv], axis=0),
            "wo_t": prep(wo), "bo": bo,
            "ln1_g": jnp.ones((D,), jnp.float32), "ln1_b": jnp.zeros((D,), jnp.float32),
            "w1_t": prep(w1), "b1": b1,
            "w2_t": prep(w2), "b2": b2,
            "ln2_g": jnp.ones((D,), jnp.float32), "ln2_b": jnp.zeros((D,), jnp.float32),
        }
        p["layers"].append(l)

    wp, bp = dense_pt(D, cfg["hidden"])                  # pre_classifier
    wc, bc = dense_pt(cfg["hidden"], cfg["n_classes"])   # classifier (77 labels)
    n_pad = ((cfg["n_classes"] + 127) // 128) * 128      # lane-dense stores
    p["wp_t"], p["bp"] = prep(wp), bp
    p["wc_t"] = jnp.zeros((cfg["hidden"], n_pad), jnp.bfloat16
                          ).at[:, : cfg["n_classes"]].set(prep(wc))
    p["bc"] = jnp.zeros((n_pad,), jnp.float32).at[: cfg["n_classes"]].set(bc)
    return p


# --------------------------------------------------------------------- main --
if __name__ == "__main__":
    # Small DistilBERT-like config (real model: d=768, 12 heads, hd=64,
    # 6 layers, ffn=3072, hidden=768).  The attention kernel loops over heads
    # inside a (1, S, D) lane-dense block, so head_dim no longer needs to be
    # 128-aligned at real shapes.
    cfg = dict(vocab=512, max_pos=64, d=256, heads=2, ffn=1024,
               n_layers=2, hidden=256, n_classes=77)

    key = jax.random.PRNGKey(0)
    pkey, ikey = jax.random.split(key)
    params = init_params(pkey, cfg)

    B, S = 2, 8
    input_ids = jax.random.randint(ikey, (B, S), 0, cfg["vocab"], dtype=jnp.int32)
    attention_mask = jnp.array([[1, 1, 1, 1, 1, 1, 1, 1],
                                [1, 1, 1, 1, 1, 1, 0, 0]], dtype=jnp.int32)

    logits = dbert_classifier_forward(params, input_ids, attention_mask, cfg)
    logits = jax.block_until_ready(logits)
    assert logits.shape == (B, cfg["n_classes"])
    assert bool(jnp.all(jnp.isfinite(logits)))
    print("KERNEL_OK")
</pallas_src>

<mosaic_0001>
module attributes {stable_mosaic.version = 11 : i64} {
  func.func @_emb_ln_kernel(%arg0: i32, %arg1: memref<1x8x256xbf16, #tpu.memory_space<vmem>>, %arg2: memref<8x256xbf16, #tpu.memory_space<vmem>>, %arg3: memref<1x256xf32, #tpu.memory_space<vmem>>, %arg4: memref<1x256xf32, #tpu.memory_space<vmem>>, %arg5: memref<1x8x256xbf16, #tpu.memory_space<vmem>>) attributes {dimension_semantics = [#tpu.dimension_semantics<parallel>], iteration_bounds = array<i64: 2>, scalar_prefetch = 0 : i64, scratch_operands = 0 : i64, tpu.core_type = #tpu.core_type<tc>, window_params = [{transform_indices = @transform_0, window_bounds = array<i64: 1, 8, 256>}, {pipeline_mode = #tpu.pipeline_mode<synchronous>, transform_indices = @transform_1, window_bounds = array<i64: 8, 256>}, {pipeline_mode = #tpu.pipeline_mode<synchronous>, transform_indices = @transform_2, window_bounds = array<i64: 1, 256>}, {pipeline_mode = #tpu.pipeline_mode<synchronous>, transform_indices = @transform_3, window_bounds = array<i64: 1, 256>}, {transform_indices = @transform_4, window_bounds = array<i64: 1, 8, 256>}]} {
    %c0 = arith.constant 0 : index
    %c0_0 = arith.constant 0 : index
    %c0_1 = arith.constant 0 : index
    %0 = vector.load %arg1[%c0, %c0_0, %c0_1] : memref<1x8x256xbf16, #tpu.memory_space<vmem>>, vector<1x8x256xbf16>
    %1 = vector.shape_cast %0 : vector<1x8x256xbf16> to vector<8x256xbf16>
    %2 = arith.extf %1 : vector<8x256xbf16> to vector<8x256xf32>
    %c0_2 = arith.constant 0 : index
    %c0_3 = arith.constant 0 : index
    %3 = vector.load %arg2[%c0_2, %c0_3] : memref<8x256xbf16, #tpu.memory_space<vmem>>, vector<8x256xbf16>
    %4 = arith.extf %3 : vector<8x256xbf16> to vector<8x256xf32>
    %5 = arith.addf %2, %4 : vector<8x256xf32>
    %cst = arith.constant dense<0.000000e+00> : vector<8xf32>
    %6 = vector.multi_reduction <add>, %5, %cst [1] : vector<8x256xf32> to vector<8xf32>
    %7 = vector.shape_cast %6 : vector<8xf32> to vector<8x1xf32>
    %cst_4 = arith.constant 2.560000e+02 : f32
    %8 = vector.broadcast %cst_4 : f32 to vector<8x1xf32>
    %9 = arith.divf %7, %8 : vector<8x1xf32>
    %10 = vector.broadcast %9 : vector<8x1xf32> to vector<8x256xf32>
    %11 = arith.subf %5, %10 : vector<8x256xf32>
    %12 = arith.mulf %11, %11 : vector<8x256xf32>
    %cst_5 = arith.constant dense<0.000000e+00> : vector<8xf32>
    %13 = vector.multi_reduction <add>, %12, %cst_5 [1] : vector<8x256xf32> to vector<8xf32>
    %14 = vector.shape_cast %13 : vector<8xf32> to vector<8x1xf32>
    %cst_6 = arith.constant 2.560000e+02 : f32
    %15 = vector.broadcast %cst_6 : f32 to vector<8x1xf32>
    %16 = arith.divf %14, %15 : vector<8x1xf32>
    %cst_7 = arith.constant 9.99999996E-13 : f32
    %17 = vector.broadcast %cst_7 : f32 to vector<8x1xf32>
    %18 = arith.addf %16, %17 : vector<8x1xf32>
    %19 = math.rsqrt %18 : vector<8x1xf32>
    %20 = vector.broadcast %19 : vector<8x1xf32> to vector<8x256xf32>
    %21 = arith.mulf %11, %20 : vector<8x256xf32>
    %c0_8 = arith.constant 0 : index
    %c0_9 = arith.constant 0 : index
    %22 = vector.load %arg3[%c0_8, %c0_9] : memref<1x256xf32, #tpu.memory_space<vmem>>, vector<1x256xf32>
    %23 = vector.broadcast %22 : vector<1x256xf32> to vector<8x256xf32>
    %24 = arith.mulf %21, %23 : vector<8x256xf32>
    %c0_10 = arith.constant 0 : index
    %c0_11 = arith.constant 0 : index
    %25 = vector.load %arg4[%c0_10, %c0_11] : memref<1x256xf32, #tpu.memory_space<vmem>>, vector<1x256xf32>
    %26 = vector.broadcast %25 : vector<1x256xf32> to vector<8x256xf32>
    %27 = arith.addf %24, %26 : vector<8x256xf32>
    %28 = arith.truncf %27 : vector<8x256xf32> to vector<8x256xbf16>
    %c0_12 = arith.constant 0 : index
    %c0_13 = arith.constant 0 : index
    %c0_14 = arith.constant 0 : index
    %29 = vector.load %arg5[%c0_12, %c0_13, %c0_14] : memref<1x8x256xbf16, #tpu.memory_space<vmem>>, vector<1x8x256xbf16>
    %30 = vector.shape_cast %29 : vector<1x8x256xbf16> to vector<8x256xbf16>
    %31 = vector.shape_cast %28 : vector<8x256xbf16> to vector<1x8x256xbf16>
    tpu.vector_store %arg5[%c0_12, %c0_13, %c0_14], %31 {strides = array<i32>} : memref<1x8x256xbf16, #tpu.memory_space<vmem>>, vector<1x8x256xbf16>,
    return
  }
  func.func @transform_0(%arg0: i32) -> (i32, i32, i32) {
    %c0_i32 = arith.constant 0 : i32
    %c0_i32_0 = arith.constant 0 : i32
    %c0_i32_1 = arith.constant 0 : i32
    return %arg0, %c0_i32, %c0_i32_0 : i32, i32, i32
  }
  func.func @transform_1(%arg0: i32) -> (i32, i32) {
    %c0_i32 = arith.constant 0 : i32
    %c0_i32_0 = arith.constant 0 : i32
    %c0_i32_1 = arith.constant 0 : i32
    return %c0_i32, %c0_i32_0 : i32, i32
  }
  func.func @transform_2(%arg0: i32) -> (i32, i32) {
    %c0_i32 = arith.constant 0 : i32
    %c0_i32_0 = arith.constant 0 : i32
    %c0_i32_1 = arith.constant 0 : i32
    return %c0_i32, %c0_i32_0 : i32, i32
  }
  func.func @transform_3(%arg0: i32) -> (i32, i32) {
    %c0_i32 = arith.constant 0 : i32
    %c0_i32_0 = arith.constant 0 : i32
    %c0_i32_1 = arith.constant 0 : i32
    return %c0_i32, %c0_i32_0 : i32, i32
  }
  func.func @transform_4(%arg0: i32) -> (i32, i32, i32) {
    %c0_i32 = arith.constant 0 : i32
    %c0_i32_0 = arith.constant 0 : i32
    %c0_i32_1 = arith.constant 0 : i32
    return %arg0, %c0_i32, %c0_i32_0 : i32, i32, i32
  }
}

</mosaic_0001>

<bundles_post_ra>
// kernel: tpu_custom_call.1
= control target key start
LH: loop header
LB: loop body
LE: loop exit
PB: predicated region body
PF: predicated region fallthrough
CT: control target
= control target key end

     0   :  { %9 = vsyncpa [#allocation3], 0  ;;  %s839_s0 = inlined_call_operand.hbm [shape: bf16[2,8,256], index: 0, kind: input, shape index: {}]   ;;  %s840_s1 = inlined_call_operand.hbm [shape: bf16[8,256], index: 1, kind: input, shape index: {}]   ;;  %s841_s2 = inlined_call_operand.hbm [shape: f32[1,256], index: 2, kind: input, shape index: {}]   ;;  %s842_s3 = inlined_call_operand.vmem [shape: f32[1,256], index: 3, kind: input, shape index: {}]   ;;  %s843_s4 = inlined_call_operand.hbm [shape: bf16[2,8,256], index: 4, kind: output, shape index: {}]  }
   0x1   :  { %11 = vsyncpa [#allocation3 + $0x1], 0 }
   0x2   :  { %12 = vsyncpa [#allocation6], 0 }
   0x3   :  { %13 = vsyncpa [#allocation4], 0 }
   0x4   :  { %15 = vsyncpa [#allocation4 + $0x1], 0  ;;  %s691_s15 = smov 0   ;;  %s693_s16 = smov 0  }
   0x5   :  { %s695_s17 = smov 0   ;;  %s697_s18 = smov 0  }
   0x6 LB: > { %s712_s19 = sadd.s32 4294967295, %s661_s18   ;;  %s409_s20 = sadd.s32 4294967294, %s661_s18   ;;  %s661_s18 = sphi %s697_s18, %s853_s18   ;;  %s657_s17 = sphi %s695_s17, %s852_s17   ;;  %s653_s16 = sphi %s693_s16, %s851_s16   ;;  %s649_s15 = sphi %s691_s15, %s850_s15  }
   0x7   : > { %p41_p0 = scmp.ne.s32.totalorder %s653_s16, %s649_s15  ;;  %p42_p1 = scmp.eq.s32.totalorder %s712_s19, 0 }
   0x8   : > { %p128_p2 = scmp.eq.s32.totalorder %s712_s19, 1  ;;  %p134_p3 = scmp.eq.s32.totalorder %s409_s20, 1 }
   0x9   : > { %p721_p4 = por %p42_p1, %p41_p0  ;;  %p410_p5 = scmp.ge.s32.totalorder %s661_s18, 1 }
   0xa   : > { %p726_p6 = por %p134_p3, %p41_p0  ;;  %p141_p7 = scmp.lt.s32.totalorder %s661_s18, 3 }
   0xb   : > { %s153_s25 = sshll.u32 %s840_s1, 4  ;;  %s663_s27 = smov [#allocation5]   ;;  %s154_s25 = int_to_ptr.hbm [resolvable:$true] %s153_s25 }
   0xc   : > { %p734_p8 = pnand %p410_p5, %p141_p7  ;;  %s155_s28 = sshll.u32 %s663_s27, 4  ;;  %s156_s28 = int_to_ptr.vmem [resolvable:$true] %s155_s28 }
   0xd   : > { %s165_s5 = sshll.u32 %s841_s2, 4  ;;  %s664_s6 = smov [#allocation7]   ;;  %s166_s5 = int_to_ptr.hbm [resolvable:$true] %s165_s5 }
   0xe   : > { %p441_p10 = pneg %p734_p8  ;;  %s167_s7 = sshll.u32 %s664_s6, 4  ;;  %s168_s7 = int_to_ptr.vmem [resolvable:$true] %s167_s7 }
   0xf   : > { %s747_s8 = sadd.s32 1, %s661_s18   ;;  %s28_s9 = sadd.s32 1, %s657_s17 }
  0x10   : > { %p442_p11 = pnand %p441_p10, %p42_p1  ;;  %s25_s10 = ssub.s32 %s661_s18, %s747_s8 }
  0x11   : > { %p35_p12 = scmp.ne.s32.totalorder %s657_s17, %s653_s16  ;;  %p26_p13 = scmp.eq.s32.totalorder %s25_s10, 0 }
  0x12   : > { %444 = dma.hbm_to_vmem [thread:$0]  (!%p442_p11), %s154_s25, 128, %s156_s28, [#allocation6]  }
  0x13   : > { %447 = dma.hbm_to_vmem [thread:$0]  (!%p442_p11), %s166_s5, 32, %s168_s7, [#allocation6]  }
  0x14   : > { %p36_p0 = scmp.eq.s32.totalorder %s661_s18, 0  ;;  %p757_p3 = por %p128_p2, %p35_p12 }
  0x15   : > { %p458_p5 = scmp.lt.s32.totalorder %s661_s18, 2  ;;  %s181_s13 = sand.u32 1, %s657_s17  }
  0x16   : > { %s763_s12 = scalar_select %p26_p13, %s657_s17, %s28_s9  }
  0x17   : > { %p37_p7 = por %p36_p0, %p35_p12  ;;  %s414_s14 = sshll.u32 %s181_s13, 3 }
  0x18   : > { %s427_s20 = sshll.u32 %s661_s18, 3  ;;  %s185_s27 = scalar_lea.vmem [#allocation2], %s414_s14 }
  0x19   : > { %s190_s25 = scalar_lea.hbm %s839_s0, %s427_s20  ;;  %s194_s28 = sshll.u32 %s185_s27, 4  ;;  %s195_s28 = int_to_ptr.vmem [resolvable:$true] %s194_s28 }
  0x1a   : > { %s192_s29 = sshll.u32 %s190_s25, 4  ;;  %p770_p2 = pnand %p458_p5, %p37_p7  ;;  %s193_s29 = int_to_ptr.hbm [resolvable:$true] %s192_s29 }
  0x1b   : > { %s182_s5 = scalar_lea.sflag [#allocation3], %s181_s13  ;;  %s561_s6 = sshra.s32 %s193_s29, 4  ;;  %s562_s6 = int_to_ptr.hbm [resolvable:$true] %s561_s6 }
  0x1c   : > { %s563_s7 = scalar_lea.hbm %s562_s6, 8  ;;  %p565_p11 = pneg %p770_p2 }
  0x1d   : > { %p564_p10 = scmp.ne.s32.totalorder %s562_s6, %s563_s7  ;;  %s568_s14 = scalar_lea.hbm %s839_s0, 16 }
  0x1e   : > { %p569_p0 = scmp.lt.s32.totalorder %s562_s6, %s839_s0  ;;  %p570_p5 = scmp.lt.s32.totalorder %s568_s14, %s563_s7 }
  0x1f   : > { %p566_p12 = pnand %p565_p11, %p564_p10 }
  0x20   : > { %p571_p7 = por %p570_p5, %p569_p0 }
  0x21   : > { %p567_p13 = pneg %p566_p12 }
  0x23   : > { %p572_p9 = pnand %p571_p7, %p567_p13 }
  0x25   : > { %575 = shalt.err (!%p572_p9)
}
  0x26   : > { %451 = dma.hbm_to_vmem [thread:$0]  (!%p770_p2), %s193_s29, 128, %s195_s28, %s182_s5  }
  0x27   : > { %203 = sbr.rel (%p734_p8) target bundleno = 327 (0x147), region = 36  ;;  %s787_s13 = sand.u32 (!%p734_p8), 1, %s653_s16  }
  0x28   : > { %s418_s24 = sshll.u32 (!%p734_p8), %s787_s13, 3  ;;  %s206_s25 = scalar_lea.sflag (!%p734_p8), [#allocation3], %s787_s13 }
  0x29   : > { %s209_s27 = scalar_lea.vmem (!%p734_p8), [#allocation2], %s418_s24 }
  0x2c   : > { %636 = dma.done.wait (%p721_p4), %s206_s25, 128  }
  0x2d   : > { %638 = vsyncadd (%p721_p4), %s206_s25, 4294967168 }
  0x2e   : > { %640 = dma.done.wait (%p42_p1), [#allocation6], 160  }
  0x2f   : > { %642 = vsyncadd (%p42_p1), [#allocation6], 4294967136  ;;  %v245_v0 = vld [vmem:[%s209_s27] sm:$0xff]  ;;  %v248_v1 = vld [vmem:[#allocation5] sm:$0xff]  ;;  %v665_v9 = vmov 256.0   ;;  %s428_s28 = sshll.u32 %s712_s19, 3 }
  0x30   : > { %v246_v2 = vunpack.c.l.bf16 %v245_v0  ;;  %v247_v3 = vunpack.c.h.bf16 %v245_v0  ;;  %v249_v4 = vunpack.c.l.bf16 %v248_v1  ;;  %v250_v5 = vunpack.c.h.bf16 %v248_v1  ;;  %v285_v30 = vld [vmem:[#allocation7] sm:$0x3]  ;;  %v293_v33 = vld [vmem:[%s842_s3] sm:$0x3]  ;;  %s315_s5 = scalar_lea.hbm %s843_s4, %s428_s28  ;;  %s244_s6 = scalar_lea.vmem [#allocation8], %s418_s24 }
  0x31   : > { %497 = vrcp.f32 %v665_v9  ;;  %v287_v34 = vperm.slane %v285_v30, 0  ;;  %v288_v35 = vperm.slane %v285_v30, 1  ;;  %v295_v39 = vperm.slane %v293_v33, 0  ;;  %s317_s7 = sshll.u32 %s244_s6, 4  ;;  %s319_s19 = sshll.u32 %s315_s5, 4  ;;  %s318_s7 = int_to_ptr.vmem [resolvable:$true] %s317_s7  ;;  %s320_s19 = int_to_ptr.hbm [resolvable:$true] %s319_s19 }
  0x32   : > { %v251_v6 = vadd.f32 %v249_v4, %v246_v2  ;;  %v252_v7 = vadd.f32 %v250_v5, %v247_v3  ;;  %v296_v40 = vperm.slane %v293_v33, 1  ;;  %s304_s9 = scalar_lea.sflag [#allocation4], %s787_s13  ;;  %s605_s10 = sshra.s32 %s320_s19, 4  ;;  %s606_s10 = int_to_ptr.hbm [resolvable:$true] %s605_s10 }
  0x33   : > { %s607_s14 = scalar_lea.hbm %s606_s10, 8  ;;  %s611_s24 = scalar_lea.hbm %s843_s4, 16 }
  0x34   : > { %v253_v8 = vadd.f32 %v252_v7, %v251_v6  ;;  %p608_p1 = scmp.ne.s32.totalorder %s606_s10, %s607_s14  ;;  %p612_p9 = scmp.lt.s32.totalorder %s606_s10, %s843_s4 }
  0x35   : > { %p613_p2 = scmp.lt.s32.totalorder %s611_s24, %s607_s14 }
  0x36   : > { %254 = vadd.xlane.f32.xlu0 %v253_v8  ;;  %p609_p4 = pnand %p608_p1, %p757_p3 }
  0x37   : > { %v498_v10 = vpop.eup %497  ;;  %p614_p10 = por %p613_p2, %p612_p9 }
  0x38   : > { %v257_v11 = vmul.f32 256.0, %v498_v10  ;;  %vm261_vm0 = vweird.f32 %v498_v10  ;;  %p610_p8 = pneg %p609_p4 }
  0x3a   : > { %v258_v12 = vsub.f32 1.0, %v257_v11  ;;  %p615_p11 = pnand %p614_p10, %p610_p8 }
  0x3c   : > { %v259_v13 = vmul.f32 %v498_v10, %v258_v12 }
  0x3e   : > { %v260_v14 = vadd.f32 %v498_v10, %v259_v13 }
  0x40   : > { %v262_v15 = vsel %vm261_vm0, %v498_v10, %v260_v14 }
  0xa9   : > { %v255_v16 = vpop.xlane.xlu0 %254 }
  0xaa   : > { %v263_v17 = vmul.f32 %v262_v15, %v255_v16 }
  0xac   : > { %v264_v18 = vsub.f32 %v251_v6, %v263_v17  ;;  %v265_v19 = vsub.f32 %v252_v7, %v263_v17 }
  0xae   : > { %v266_v20 = vmul.f32 %v264_v18, %v264_v18  ;;  %v267_v21 = vmul.f32 %v265_v19, %v265_v19 }
  0xb0   : > { %v268_v22 = vadd.f32 %v267_v21, %v266_v20 }
  0xb2   : > { %269 = vadd.xlane.f32.xlu0 %v268_v22 }
 0x125   : > { %v270_v23 = vpop.xlane.xlu0 %269 }
 0x126   : > { %v271_v24 = vmul.f32 %v270_v23, %v262_v15 }
 0x128   : > { %v272_v25 = vadd.f32 1e-12, %v271_v24 }
 0x12a   : > { %499 = vrsqrt.f32 %v272_v25  ;;  %vm279_vm2 = vweird.f32 %v272_v25 }
 0x130   : > { %v500_v26 = vpop.eup %499 }
 0x131   : > { %v274_v27 = vmul.f32 %v500_v26, %v272_v25  ;;  %vm280_vm1 = vweird.f32 %v500_v26 }
 0x132   : > { %vm281_vm3 = vmor %vm279_vm2, %vm280_vm1 }
 0x133   : > { %v275_v28 = vmul.f32 %v500_v26, %v274_v27 }
 0x135   : > { %v276_v29 = vmul.f32 0.5, %v275_v28 }
 0x137   : > { %v277_v31 = vsub.f32 1.5, %v276_v29 }
 0x139   : > { %v278_v32 = vmul.f32 %v500_v26, %v277_v31 }
 0x13b   : > { %v282_v36 = vsel %vm281_vm3, %v500_v26, %v278_v32 }
 0x13c   : > { %v283_v37 = vmul.f32 %v282_v36, %v264_v18  ;;  %v284_v38 = vmul.f32 %v282_v36, %v265_v19 }
 0x13e   : > { %v291_v41 = vmul.f32 %v287_v34, %v283_v37  ;;  %v292_v42 = vmul.f32 %v288_v35, %v284_v38 }
 0x140   : > { %v299_v43 = vadd.f32 %v295_v39, %v291_v41  ;;  %v300_v44 = vadd.f32 %v296_v40, %v292_v42 }
 0x142   : > { %v301_v45 = vpack.c.bf16 %v300_v44, %v299_v43 }
 0x144   : > { %302 = vst [vmem:[%s244_s6] sm:$0xff] %v301_v45 }
 0x145   : > { %618 = shalt.err (!%p615_p11)
}
 0x146   : > { %439 = dma.vmem_to_hbm [thread:$0]  (%p757_p3), %s318_s7, 128, %s320_s19, %s304_s9  }
 0x147 PF: > { %s331_s13 = sand.u32 1, %s649_s15   ;;  %p849_p12 = scmp.ge.s32.totalorder %s661_s18, 2 }
 0x148   : > { %s332_s21 = scalar_lea.sflag [#allocation4], %s331_s13 }
 0x149   : > { %p453_p13 = pnand %p849_p12, %p726_p6 }
 0x14b   : > { %p454_p0 = pneg %p453_p13 }
 0x14d   : > { %644 = dma.done.wait (%p454_p0), %s332_s21, 128  }
 0x14e   : > { %646 = vsyncadd (%p454_p0), %s332_s21, 4294967168  ;;  %p18_p5 = scmp.ge.s32.totalorder %s747_s8, 4   ;;  %s850_s15 = smov %s653_s16 }
 0x14f   : > { %s851_s16 = smov %s657_s17  ;;  %s852_s17 = smov %s763_s12 }
 0x150   : > { %s853_s18 = smov %s747_s8  ;;  %20 = sbr.rel (!%p18_p5) target bundleno = 6 (0x6), region = 89 }
 0x155   :  { %338 = vsyncpa [#allocation3], 1 }
 0x156   :  { %340 = vsyncpa [#allocation3 + $0x1], 1 }
 0x157   :  { %341 = vsyncpa [#allocation6], 1 }
 0x158   :  { %342 = vsyncpa [#allocation4], 1 }
 0x159   :  { %344 = vsyncpa [#allocation4 + $0x1], 1 }

</bundles_post_ra>
